<compile_context>
chip_gen: v7x
topology: tpu7x:2x2x1
jax: 0.10.0
libtpu: 0.0.40
codegen_flags: <defaults>
</compile_context>

<pallas_src>
import functools

import jax
import jax.numpy as jnp
from jax.experimental import pallas as pl
from jax.experimental.pallas import tpu as pltpu


def _batch_conv_kernel(x_ref, w_ref, g_ref, b_ref, o_ref, acc_ref, *,
                       kernel_size, pad_left, eps):
    T, N, Hb = x_ref.shape
    inv_tn = 1.0 / float(T * N)

    # ---- BatchNorm statistics (per feature, over the full T*N extent of this tile) ----
    xf = x_ref[...].astype(jnp.float32)                                  # (T, N, Hb)
    s1 = jnp.sum(jnp.sum(xf, axis=0, keepdims=True), axis=1, keepdims=True)       # (1,1,Hb)
    s2 = jnp.sum(jnp.sum(xf * xf, axis=0, keepdims=True), axis=1, keepdims=True)  # (1,1,Hb)
    mean = s1 * inv_tn
    var = jnp.maximum(s2 * inv_tn - mean * mean, 0.0)    # clamp guards cancellation
    gamma = g_ref[...].astype(jnp.float32).reshape(1, 1, Hb)
    beta = b_ref[...].astype(jnp.float32).reshape(1, 1, Hb)
    a = jax.lax.rsqrt(var + eps) * gamma                 # fused BN affine: xn = x*a + b
    b = beta - mean * a

    # ---- depthwise conv along T with the affine fused in; no padded copy.
    # out[t] = sum_k w[k] * xn[t + k - pad_left], terms outside [0, T) are the
    # zero-pad contributions and are simply skipped via boundary-aware slices.
    K = kernel_size
    order = [pad_left] + [k for k in range(K) if k != pad_left]  # k==pad_left covers all t
    for idx, k in enumerate(order):
        dst0 = max(0, pad_left - k)
        dst1 = min(T, T + pad_left - k)
        if dst1 <= dst0:
            continue
        src0 = dst0 + k - pad_left
        wk = w_ref[k:k + 1, :].astype(jnp.float32).reshape(1, 1, Hb)
        wka = wk * a                                      # (1,1,Hb), hoisted per k
        wkb = wk * b
        xs = x_ref[src0:src0 + (dst1 - dst0)].astype(jnp.float32)
        contrib = xs * wka + wkb
        if idx == 0:
            acc_ref[...] = contrib                        # full-range term initializes acc
        else:
            acc_ref[dst0:dst1] = acc_ref[dst0:dst1] + contrib

    # ---- Hardtanh(0, 20) ----
    o_ref[...] = jnp.clip(acc_ref[...], 0.0, 20.0).astype(o_ref.dtype)


def batch_conv_forward(x, conv_weight_kh, gamma, beta, *, kernel_size, algorithm,
                       eps=1e-5):
    """x: (T, N, H); conv_weight_kh: (K, H) (squeezed PyTorch (H,1,K) weight, K-major);
    gamma, beta: (1, H)."""
    if algorithm == 'lookahead':
        pad_left = 0
    elif algorithm == 'wav2letter':
        if kernel_size % 2 == 0:
            raise AttributeError('kernel_size must be odd')
        pad_left = (kernel_size - 1) // 2
    else:
        raise AttributeError('algorithm must be lookahead or wav2letter')

    T, N, H = x.shape
    K = kernel_size
    LANE = 128

    # Pad features to a multiple of 128 -> lane-dense (unmasked) output stores.
    # Padded lanes get zero weight, so their output is exactly 0 and is sliced off.
    Hp = ((H + LANE - 1) // LANE) * LANE
    if Hp != H:
        x = jnp.pad(x, ((0, 0), (0, 0), (0, Hp - H)))
        conv_weight_kh = jnp.pad(conv_weight_kh, ((0, 0), (0, Hp - H)))
        gamma = jnp.pad(gamma, ((0, 0), (0, Hp - H)), constant_values=1.0)
        beta = jnp.pad(beta, ((0, 0), (0, Hp - H)))

    # Per-generation H tile: double-buffered in/out blocks + f32 accumulator scratch
    # sized against this device's VMEM capacity (v7x 64 MiB vs v5e/v6e 128 MiB).
    try:
        vmem_cap = int(pltpu.get_tpu_info().vmem_capacity_bytes)
    except Exception:
        vmem_cap = 64 * 1024 * 1024   # conservative fallback (v7x per-core)
    budget = int(vmem_cap * 0.6)
    bpe = x.dtype.itemsize
    per_feature = T * N * (2 * bpe + 2 * bpe + 4)   # 2x in + 2x out (double-buffer) + f32 acc
    hb = max(LANE, (budget // max(per_feature, 1)) // LANE * LANE)
    hb = min(hb, Hp)
    while Hp % hb != 0:          # Hp is a multiple of 128, so this terminates at <=128
        hb -= LANE
    # TODO(synk): for sequences where even a (T, N, 128) tile exceeds VMEM, add a T
    # grid axis ("arbitrary") with a two-phase sum/sumsq reduction (or precompute the
    # BN stats with a tiny reduction kernel) so the conv streams over T as well.

    tile_bytes = hb * per_feature
    vmem_limit = int(min(int(vmem_cap * 0.8), max(tile_bytes + (8 << 20), 32 << 20)))

    kern = functools.partial(_batch_conv_kernel, kernel_size=K,
                             pad_left=pad_left, eps=eps)
    out = pl.pallas_call(
        kern,
        out_shape=jax.ShapeDtypeStruct((T, N, Hp), x.dtype),
        grid=(Hp // hb,),
        in_specs=[
            pl.BlockSpec((T, N, hb), lambda h: (0, 0, h)),
            pl.BlockSpec((K, hb), lambda h: (0, h)),
            pl.BlockSpec((1, hb), lambda h: (0, h)),
            pl.BlockSpec((1, hb), lambda h: (0, h)),
        ],
        out_specs=pl.BlockSpec((T, N, hb), lambda h: (0, 0, h)),
        scratch_shapes=[pltpu.VMEM((T, N, hb), jnp.float32)],
        compiler_params=pltpu.CompilerParams(
            dimension_semantics=("parallel",),
            vmem_limit_bytes=vmem_limit,
        ),
    )(x, conv_weight_kh, gamma, beta)

    return out[:, :, :H] if Hp != H else out


def batch_conv_reference(x, conv_weight_kh, gamma, beta, *, kernel_size, algorithm,
                         eps=1e-5):
    """Pure-JAX reference mirroring the PyTorch forward."""
    T, N, H = x.shape
    xf = x.reshape(T * N, H)
    mean = jnp.mean(xf, axis=0)
    var = jnp.mean((xf - mean) ** 2, axis=0)
    xn = ((xf - mean) / jnp.sqrt(var + eps) * gamma[0] + beta[0]).reshape(T, N, H)
    if algorithm == 'lookahead':
        pad = (0, kernel_size - 1)
    else:
        p = (kernel_size - 1) // 2
        pad = (p, p)
    xp = jnp.pad(xn, ((pad[0], pad[1]), (0, 0), (0, 0)))
    out = jnp.zeros((T, N, H), jnp.float32)
    for k in range(kernel_size):
        out = out + conv_weight_kh[k][None, None, :] * xp[k:k + T]
    return jnp.clip(out, 0.0, 20.0)


if __name__ == "__main__":
    key = jax.random.PRNGKey(0)
    T, N, H, K = 8, 2, 32, 3          # seq=8, batch=2, input_size=32, kernel_size=3
    kx, kw, kg, kb = jax.random.split(key, 4)

    x = jax.random.normal(kx, (T, N, H), dtype=jnp.float32)
    # Conv1d default init: U(-1/sqrt(fan_in), 1/sqrt(fan_in)), fan_in = (C_in/groups)*K = K
    bound = 1.0 / (K ** 0.5)
    conv_w = jax.random.uniform(kw, (K, H), minval=-bound, maxval=bound,
                                dtype=jnp.float32)
    # Non-trivial affine params to exercise the fused BN path.
    gamma = 1.0 + 0.1 * jax.random.normal(kg, (1, H), dtype=jnp.float32)
    beta = 0.1 * jax.random.normal(kb, (1, H), dtype=jnp.float32)

    ok = True
    for algo in ("wav2letter", "lookahead"):
        out = batch_conv_forward(x, conv_w, gamma, beta,
                                 kernel_size=K, algorithm=algo)
        out = jax.block_until_ready(out)
        ref = batch_conv_reference(x, conv_w, gamma, beta,
                                   kernel_size=K, algorithm=algo)
        ok = ok and bool(jnp.allclose(out, ref, atol=1e-4, rtol=1e-4))

    if ok:
        print("KERNEL_OK")
</pallas_src>

<mosaic_0001>
module attributes {stable_mosaic.version = 11 : i64} {
  func.func @_batch_conv_kernel(%arg0: i32, %arg1: memref<8x2x128xf32, #tpu.memory_space<vmem>>, %arg2: memref<3x128xf32, #tpu.memory_space<vmem>>, %arg3: memref<1x128xf32, #tpu.memory_space<vmem>>, %arg4: memref<1x128xf32, #tpu.memory_space<vmem>>, %arg5: memref<8x2x128xf32, #tpu.memory_space<vmem>>, %arg6: memref<8x2x128xf32, #tpu.memory_space<vmem>>) attributes {dimension_semantics = [#tpu.dimension_semantics<parallel>], iteration_bounds = array<i64: 1>, scalar_prefetch = 0 : i64, scratch_operands = 1 : i64, tpu.core_type = #tpu.core_type<tc>, window_params = [{transform_indices = @transform_0, window_bounds = array<i64: 8, 2, 128>}, {transform_indices = @transform_1, window_bounds = array<i64: 3, 128>}, {transform_indices = @transform_2, window_bounds = array<i64: 1, 128>}, {transform_indices = @transform_3, window_bounds = array<i64: 1, 128>}, {transform_indices = @transform_4, window_bounds = array<i64: 8, 2, 128>}]} {
    %c0 = arith.constant 0 : index
    %c0_0 = arith.constant 0 : index
    %c0_1 = arith.constant 0 : index
    %0 = vector.load %arg1[%c0, %c0_0, %c0_1] : memref<8x2x128xf32, #tpu.memory_space<vmem>>, vector<8x2x128xf32>
    %cst = arith.constant dense<0.000000e+00> : vector<2x128xf32>
    %1 = vector.multi_reduction <add>, %0, %cst [0] : vector<8x2x128xf32> to vector<2x128xf32>
    %2 = vector.shape_cast %1 : vector<2x128xf32> to vector<1x2x128xf32>
    %cst_2 = arith.constant dense<0.000000e+00> : vector<1x128xf32>
    %3 = vector.multi_reduction <add>, %2, %cst_2 [1] : vector<1x2x128xf32> to vector<1x128xf32>
    %4 = vector.shape_cast %3 : vector<1x128xf32> to vector<1x1x128xf32>
    %5 = arith.mulf %0, %0 : vector<8x2x128xf32>
    %cst_3 = arith.constant dense<0.000000e+00> : vector<2x128xf32>
    %6 = vector.multi_reduction <add>, %5, %cst_3 [0] : vector<8x2x128xf32> to vector<2x128xf32>
    %7 = vector.shape_cast %6 : vector<2x128xf32> to vector<1x2x128xf32>
    %cst_4 = arith.constant dense<0.000000e+00> : vector<1x128xf32>
    %8 = vector.multi_reduction <add>, %7, %cst_4 [1] : vector<1x2x128xf32> to vector<1x128xf32>
    %9 = vector.shape_cast %8 : vector<1x128xf32> to vector<1x1x128xf32>
    %cst_5 = arith.constant 6.250000e-02 : f32
    %10 = vector.broadcast %cst_5 : f32 to vector<1x1x128xf32>
    %11 = arith.mulf %4, %10 : vector<1x1x128xf32>
    %cst_6 = arith.constant 6.250000e-02 : f32
    %12 = vector.broadcast %cst_6 : f32 to vector<1x1x128xf32>
    %13 = arith.mulf %9, %12 : vector<1x1x128xf32>
    %14 = arith.mulf %11, %11 : vector<1x1x128xf32>
    %15 = arith.subf %13, %14 : vector<1x1x128xf32>
    %cst_7 = arith.constant 0.000000e+00 : f32
    %16 = vector.broadcast %cst_7 : f32 to vector<1x1x128xf32>
    %17 = arith.maximumf %15, %16 : vector<1x1x128xf32>
    %c0_8 = arith.constant 0 : index
    %c0_9 = arith.constant 0 : index
    %18 = vector.load %arg3[%c0_8, %c0_9] : memref<1x128xf32, #tpu.memory_space<vmem>>, vector<1x128xf32>
    %19 = vector.shape_cast %18 : vector<1x128xf32> to vector<1x1x128xf32>
    %c0_10 = arith.constant 0 : index
    %c0_11 = arith.constant 0 : index
    %20 = vector.load %arg4[%c0_10, %c0_11] : memref<1x128xf32, #tpu.memory_space<vmem>>, vector<1x128xf32>
    %21 = vector.shape_cast %20 : vector<1x128xf32> to vector<1x1x128xf32>
    %cst_12 = arith.constant 9.99999974E-6 : f32
    %22 = vector.broadcast %cst_12 : f32 to vector<1x1x128xf32>
    %23 = arith.addf %17, %22 : vector<1x1x128xf32>
    %24 = math.rsqrt %23 : vector<1x1x128xf32>
    %25 = arith.mulf %24, %19 : vector<1x1x128xf32>
    %26 = arith.mulf %11, %25 : vector<1x1x128xf32>
    %27 = arith.subf %21, %26 : vector<1x1x128xf32>
    %c1 = arith.constant 1 : index
    %c0_13 = arith.constant 0 : index
    %28 = vector.load %arg2[%c1, %c0_13] : memref<3x128xf32, #tpu.memory_space<vmem>>, vector<1x128xf32>
    %29 = vector.shape_cast %28 : vector<1x128xf32> to vector<1x1x128xf32>
    %30 = arith.mulf %29, %25 : vector<1x1x128xf32>
    %31 = arith.mulf %29, %27 : vector<1x1x128xf32>
    %c0_14 = arith.constant 0 : index
    %c0_15 = arith.constant 0 : index
    %c0_16 = arith.constant 0 : index
    %32 = vector.load %arg1[%c0_14, %c0_15, %c0_16] : memref<8x2x128xf32, #tpu.memory_space<vmem>>, vector<8x2x128xf32>
    %33 = vector.broadcast %30 : vector<1x1x128xf32> to vector<8x2x128xf32>
    %34 = arith.mulf %32, %33 : vector<8x2x128xf32>
    %35 = vector.broadcast %31 : vector<1x1x128xf32> to vector<8x2x128xf32>
    %36 = arith.addf %34, %35 : vector<8x2x128xf32>
    %c0_17 = arith.constant 0 : index
    %c0_18 = arith.constant 0 : index
    %c0_19 = arith.constant 0 : index
    %37 = vector.load %arg6[%c0_17, %c0_18, %c0_19] : memref<8x2x128xf32, #tpu.memory_space<vmem>>, vector<8x2x128xf32>
    tpu.vector_store %arg6[%c0_17, %c0_18, %c0_19], %36 {strides = array<i32>} : memref<8x2x128xf32, #tpu.memory_space<vmem>>, vector<8x2x128xf32>,
    %c0_20 = arith.constant 0 : index
    %c0_21 = arith.constant 0 : index
    %38 = vector.load %arg2[%c0_20, %c0_21] : memref<3x128xf32, #tpu.memory_space<vmem>>, vector<1x128xf32>
    %39 = vector.shape_cast %38 : vector<1x128xf32> to vector<1x1x128xf32>
    %40 = arith.mulf %39, %25 : vector<1x1x128xf32>
    %41 = arith.mulf %39, %27 : vector<1x1x128xf32>
    %c0_22 = arith.constant 0 : index
    %c0_23 = arith.constant 0 : index
    %c0_24 = arith.constant 0 : index
    %42 = vector.load %arg1[%c0_22, %c0_23, %c0_24] : memref<8x2x128xf32, #tpu.memory_space<vmem>>, vector<7x2x128xf32>
    %43 = vector.broadcast %40 : vector<1x1x128xf32> to vector<7x2x128xf32>
    %44 = arith.mulf %42, %43 : vector<7x2x128xf32>
    %45 = vector.broadcast %41 : vector<1x1x128xf32> to vector<7x2x128xf32>
    %46 = arith.addf %44, %45 : vector<7x2x128xf32>
    %c1_25 = arith.constant 1 : index
    %c0_26 = arith.constant 0 : index
    %c0_27 = arith.constant 0 : index
    %47 = vector.load %arg6[%c1_25, %c0_26, %c0_27] : memref<8x2x128xf32, #tpu.memory_space<vmem>>, vector<7x2x128xf32>
    %48 = arith.addf %47, %46 : vector<7x2x128xf32>
    %c1_28 = arith.constant 1 : index
    %c0_29 = arith.constant 0 : index
    %c0_30 = arith.constant 0 : index
    %49 = vector.load %arg6[%c1_28, %c0_29, %c0_30] : memref<8x2x128xf32, #tpu.memory_space<vmem>>, vector<7x2x128xf32>
    tpu.vector_store %arg6[%c1_28, %c0_29, %c0_30], %48 {strides = array<i32>} : memref<8x2x128xf32, #tpu.memory_space<vmem>>, vector<7x2x128xf32>,
    %c2 = arith.constant 2 : index
    %c0_31 = arith.constant 0 : index
    %50 = vector.load %arg2[%c2, %c0_31] : memref<3x128xf32, #tpu.memory_space<vmem>>, vector<1x128xf32>
    %51 = vector.shape_cast %50 : vector<1x128xf32> to vector<1x1x128xf32>
    %52 = arith.mulf %51, %25 : vector<1x1x128xf32>
    %53 = arith.mulf %51, %27 : vector<1x1x128xf32>
    %c1_32 = arith.constant 1 : index
    %c0_33 = arith.constant 0 : index
    %c0_34 = arith.constant 0 : index
    %54 = vector.load %arg1[%c1_32, %c0_33, %c0_34] : memref<8x2x128xf32, #tpu.memory_space<vmem>>, vector<7x2x128xf32>
    %55 = vector.broadcast %52 : vector<1x1x128xf32> to vector<7x2x128xf32>
    %56 = arith.mulf %54, %55 : vector<7x2x128xf32>
    %57 = vector.broadcast %53 : vector<1x1x128xf32> to vector<7x2x128xf32>
    %58 = arith.addf %56, %57 : vector<7x2x128xf32>
    %c0_35 = arith.constant 0 : index
    %c0_36 = arith.constant 0 : index
    %c0_37 = arith.constant 0 : index
    %59 = vector.load %arg6[%c0_35, %c0_36, %c0_37] : memref<8x2x128xf32, #tpu.memory_space<vmem>>, vector<7x2x128xf32>
    %60 = arith.addf %59, %58 : vector<7x2x128xf32>
    %c0_38 = arith.constant 0 : index
    %c0_39 = arith.constant 0 : index
    %c0_40 = arith.constant 0 : index
    %61 = vector.load %arg6[%c0_38, %c0_39, %c0_40] : memref<8x2x128xf32, #tpu.memory_space<vmem>>, vector<7x2x128xf32>
    tpu.vector_store %arg6[%c0_38, %c0_39, %c0_40], %60 {strides = array<i32>} : memref<8x2x128xf32, #tpu.memory_space<vmem>>, vector<7x2x128xf32>,
    %c0_41 = arith.constant 0 : index
    %c0_42 = arith.constant 0 : index
    %c0_43 = arith.constant 0 : index
    %62 = vector.load %arg6[%c0_41, %c0_42, %c0_43] : memref<8x2x128xf32, #tpu.memory_space<vmem>>, vector<8x2x128xf32>
    %cst_44 = arith.constant 0.000000e+00 : f32
    %cst_45 = arith.constant 2.000000e+01 : f32
    %63 = vector.broadcast %cst_44 : f32 to vector<8x2x128xf32>
    %64 = arith.maximumf %63, %62 : vector<8x2x128xf32>
    %65 = vector.broadcast %cst_45 : f32 to vector<8x2x128xf32>
    %66 = arith.minimumf %65, %64 : vector<8x2x128xf32>
    %c0_46 = arith.constant 0 : index
    %c0_47 = arith.constant 0 : index
    %c0_48 = arith.constant 0 : index
    %67 = vector.load %arg5[%c0_46, %c0_47, %c0_48] : memref<8x2x128xf32, #tpu.memory_space<vmem>>, vector<8x2x128xf32>
    tpu.vector_store %arg5[%c0_46, %c0_47, %c0_48], %66 {strides = array<i32>} : memref<8x2x128xf32, #tpu.memory_space<vmem>>, vector<8x2x128xf32>,
    return
  }
  func.func @transform_0(%arg0: i32) -> (i32, i32, i32) {
    %c0_i32 = arith.constant 0 : i32
    %c0_i32_0 = arith.constant 0 : i32
    %c0_i32_1 = arith.constant 0 : i32
    return %c0_i32, %c0_i32_0, %arg0 : i32, i32, i32
  }
  func.func @transform_1(%arg0: i32) -> (i32, i32) {
    %c0_i32 = arith.constant 0 : i32
    %c0_i32_0 = arith.constant 0 : i32
    return %c0_i32, %arg0 : i32, i32
  }
  func.func @transform_2(%arg0: i32) -> (i32, i32) {
    %c0_i32 = arith.constant 0 : i32
    %c0_i32_0 = arith.constant 0 : i32
    return %c0_i32, %arg0 : i32, i32
  }
  func.func @transform_3(%arg0: i32) -> (i32, i32) {
    %c0_i32 = arith.constant 0 : i32
    %c0_i32_0 = arith.constant 0 : i32
    return %c0_i32, %arg0 : i32, i32
  }
  func.func @transform_4(%arg0: i32) -> (i32, i32, i32) {
    %c0_i32 = arith.constant 0 : i32
    %c0_i32_0 = arith.constant 0 : i32
    %c0_i32_1 = arith.constant 0 : i32
    return %c0_i32, %c0_i32_0, %arg0 : i32, i32, i32
  }
}

</mosaic_0001>

<bundles_post_ra>
// kernel: tpu_custom_call.1
= control target key start
LH: loop header
LB: loop body
LE: loop exit
PB: predicated region body
PF: predicated region fallthrough
CT: control target
= control target key end

     0   :  { %9 = vsyncpa [#allocation4], 0  ;;  %s542_s0 = inlined_call_operand.hbm [shape: f32[8,2,128], index: 0, kind: input, shape index: {}]   ;;  %s543_s1 = inlined_call_operand.hbm [shape: f32[3,128], index: 1, kind: input, shape index: {}]   ;;  %s544_s2 = inlined_call_operand.vmem [shape: f32[1,128], index: 2, kind: input, shape index: {}]   ;;  %s545_s3 = inlined_call_operand.vmem [shape: f32[1,128], index: 3, kind: input, shape index: {}]   ;;  %s546_s4 = inlined_call_operand.hbm [shape: f32[8,2,128], index: 4, kind: output, shape index: {}]  }
   0x1   :  { %10 = vsyncpa [#allocation7], 0 }
   0x2   :  { %11 = vsyncpa [#allocation5], 0  ;;  %s389_s15 = smov [#allocation3]   ;;  %s317_s19 = scalar_lea.hbm %s542_s0, 256 }
   0x3   :  { %s17_s16 = sshll.u32 %s389_s15, 4  ;;  %p318_p0 = scmp.ne.s32.totalorder %s542_s0, %s317_s19  ;;  %s18_s16 = int_to_ptr.vmem [resolvable:$true] %s17_s16 }
   0x4   :  { %p321_p1 = scmp.lt.u32.totalorder %s317_s19, %s542_s0 }
   0x6   :  { %p323_p2 = pnand %p321_p1, %p318_p0 }
   0x8   :  { %326 = shalt.err (!%p323_p2)
}
   0x9   :  { %s327_s24 = scalar_lea.vmem %s18_s16, 256  ;;  %p332_p4 = scmp.lt.s32.totalorder %s18_s16, %s18_s16 }
   0xa   :  { %p328_p3 = scmp.ne.s32.totalorder %s18_s16, %s327_s24  ;;  %p333_p5 = scmp.lt.s32.totalorder %s327_s24, %s327_s24 }
   0xc   :  { %p334_p6 = por %p333_p5, %p332_p4 }
   0xe   :  { %p335_p7 = pnand %p334_p6, %p328_p3 }
  0x10   :  { %338 = shalt.err (!%p335_p7)
}
  0x11   :  { %s390_s25 = smov 32   ;;  %s391_s26 = smov 2  }
  0x12   :  { %23 = dma.hbm_to_vmem [thread:$0]  %s542_s0, 256, %s18_s16, [#allocation4], %s390_s25, %s390_s25, %s391_s26  }
  0x13   :  { %s392_s29 = smov [#allocation6]   ;;  %s339_s7 = scalar_lea.hbm %s543_s1, 64 }
  0x14   :  { %s30_s30 = sshll.u32 %s392_s29, 4  ;;  %p340_p8 = scmp.ne.s32.totalorder %s543_s1, %s339_s7  ;;  %s31_s30 = int_to_ptr.vmem [resolvable:$true] %s30_s30 }
  0x15   :  { %p343_p9 = scmp.lt.u32.totalorder %s339_s7, %s543_s1 }
  0x17   :  { %p345_p10 = pnand %p343_p9, %p340_p8 }
  0x19   :  { %348 = shalt.err (!%p345_p10)
}
  0x1a   :  { %s349_s12 = scalar_lea.vmem %s31_s30, 64  ;;  %p354_p12 = scmp.lt.s32.totalorder %s31_s30, %s31_s30 }
  0x1b   :  { %p350_p11 = scmp.ne.s32.totalorder %s31_s30, %s349_s12  ;;  %p355_p13 = scmp.lt.s32.totalorder %s349_s12, %s349_s12 }
  0x1d   :  { %p356_p0 = por %p355_p13, %p354_p12 }
  0x1f   :  { %p357_p1 = pnand %p356_p0, %p350_p11 }
  0x21   :  { %360 = shalt.err (!%p357_p1)
}
  0x22   :  { %33 = dma.hbm_to_vmem [thread:$0]  %s543_s1, 64, %s31_s30, [#allocation7]  }
  0x23   :  { %383 = dma.done.wait [#allocation4], 256  }
  0x24   :  { %384 = vsyncadd [#allocation4], 4294967040 }
  0x25   :  { %385 = dma.done.wait [#allocation7], 64  }
  0x26   :  { %386 = vsyncadd [#allocation7], 4294967232  ;;  %vm52_vm0 = vcmask 1041408   ;;  %v446_v0 = vld [vmem:[#allocation3] sm:$0x3] }
  0x27   :  { %v448_v1 = vld [vmem:[#allocation3 + $0x2] sm:$0x3]  ;;  %v450_v2 = vld [vmem:[#allocation3 + $0x4] sm:$0x3]  ;;  %v452_v3 = vld [vmem:[#allocation3 + $0x6] sm:$0x3]  ;;  %v75_v4 = vmul.f32 %v446_v0, %v446_v0 }
  0x28   :  { %v53_v5 = vsel %vm52_vm0, %v446_v0, 0.0  ;;  %v54_v6 = vsel %vm52_vm0, %v448_v1, 0.0  ;;  %v76_v7 = vmul.f32 %v448_v1, %v448_v1  ;;  %v77_v8 = vmul.f32 %v450_v2, %v450_v2  ;;  %v464_v9 = vld [vmem:[#allocation3 + $0x8] sm:$0x3]  ;;  %v472_v14 = vld [vmem:[#allocation3 + $0xa] sm:$0x3] }
  0x29   :  { %v55_v10 = vadd.f32 %v54_v6, %v53_v5  ;;  %v56_v11 = vsel %vm52_vm0, %v450_v2, 0.0  ;;  %v58_v12 = vsel %vm52_vm0, %v452_v3, 0.0  ;;  %v78_v13 = vmul.f32 %v452_v3, %v452_v3  ;;  %v481_v21 = vld [vmem:[#allocation3 + $0xc] sm:$0x3]  ;;  %v488_v27 = vld [vmem:[#allocation3 + $0xe] sm:$0x3] }
  0x2a   :  { %v83_v16 = vsel %vm52_vm0, %v75_v4, 0.0  ;;  %v60_v17 = vsel %vm52_vm0, %v464_v9, 0.0  ;;  %v79_v18 = vmul.f32 %v464_v9, %v464_v9  ;;  %v84_v19 = vsel %vm52_vm0, %v76_v7, 0.0 }
  0x2b   :  { %v57_v15 = vadd.f32 %v56_v11, %v55_v10  ;;  %v86_v20 = vsel %vm52_vm0, %v77_v8, 0.0  ;;  %v85_v23 = vadd.f32 %v84_v19, %v83_v16  ;;  %v62_v24 = vsel %vm52_vm0, %v472_v14, 0.0  ;;  %v110_v8 = vld [vmem:[%s544_s2] sm:$0x1]  ;;  %v117_v11 = vld [vmem:[#allocation6 + $0x1] sm:$0x1] }
  0x2c   :  { %v80_v25 = vmul.f32 %v472_v14, %v472_v14  ;;  %v88_v26 = vsel %vm52_vm0, %v78_v13, 0.0  ;;  %v64_v30 = vsel %vm52_vm0, %v481_v21, 0.0  ;;  %v81_v31 = vmul.f32 %v481_v21, %v481_v21  ;;  %v111_v16 = vld [vmem:[%s545_s3] sm:$0x1]  ;;  %s393_s2 = smov [#allocation8]  }
  0x2d   :  { %v59_v22 = vadd.f32 %v58_v12, %v57_v15  ;;  %v87_v29 = vadd.f32 %v86_v20, %v85_v23  ;;  %v90_v32 = vsel %vm52_vm0, %v79_v18, 0.0  ;;  %v66_v35 = vsel %vm52_vm0, %v488_v27, 0.0  ;;  %v152_v12 = vld [vmem:[#allocation6] sm:$0x1]  ;;  %v206_v20 = vld [vmem:[#allocation6 + $0x2] sm:$0x1] }
  0x2e   :  { %v82_v36 = vmul.f32 %v488_v27, %v488_v27  ;;  %v92_v37 = vsel %vm52_vm0, %v80_v25, 0.0  ;;  %v94_v40 = vsel %vm52_vm0, %v81_v31, 0.0  ;;  %v120_v6 = vlaneseq  ;;  %v155_v31 = vld [vmem:[#allocation3] sm:$0x3]  ;;  %s297_s3 = sshll.u32 %s393_s2, 4  ;;  %s298_s3 = int_to_ptr.vmem [resolvable:$true] %s297_s3 }
  0x2f   :  { %v61_v28 = vadd.f32 %v60_v17, %v59_v22  ;;  %v89_v34 = vadd.f32 %v88_v26, %v87_v29  ;;  %s361_s17 = scalar_lea.vmem %s298_s3, 256  ;;  %p366_p3 = scmp.lt.s32.totalorder %s298_s3, %s298_s3 }
  0x30   :  { %v96_v43 = vsel %vm52_vm0, %v82_v36, 0.0  ;;  %v121_v7 = vshrl.u32 %v120_v6, 7  ;;  %v213_v6 = vld [vmem:[#allocation3 + $0x8] sm:$0x3]  ;;  %p362_p2 = scmp.ne.s32.totalorder %s298_s3, %s361_s17  ;;  %p367_p4 = scmp.lt.s32.totalorder %s361_s17, %s361_s17 }
  0x31   :  { %v63_v33 = vadd.f32 %v62_v24, %v61_v28  ;;  %v91_v39 = vadd.f32 %v90_v32, %v89_v34 }
  0x32   :  { %v122_v15 = vsub.s32 0, %v121_v7  ;;  %p368_p5 = por %p367_p4, %p366_p3 }
  0x33   :  { %v65_v38 = vadd.f32 %v64_v30, %v63_v33  ;;  %v93_v42 = vadd.f32 %v92_v37, %v91_v39 }
  0x34   :  { %p369_p6 = pnand %p368_p5, %p362_p2 }
  0x35   :  { %v67_v41 = vadd.f32 %v66_v35, %v65_v38  ;;  %v95_v45 = vadd.f32 %v94_v40, %v93_v42  ;;  %v156_v40 = vld [vmem:[#allocation3 + $0x2] sm:$0x3] }
  0x37   :  { %v68_v44 = vsel %vm52_vm0, %v67_v41, 0.0  ;;  %v97_v47 = vadd.f32 %v96_v43, %v95_v45 }
  0x38   :  { %v69_v46 = vrot.slane %v68_v44, 4 }
  0x39   :  { %v98_v49 = vsel %vm52_vm0, %v97_v47, 0.0  ;;  %v161_v47 = vld [vmem:[#allocation3 + $0xc] sm:$0x3] }
  0x3a   :  { %v70_v48 = vadd.f32 %v69_v46, %v68_v44  ;;  %v99_v51 = vrot.slane %v98_v49, 4  ;;  %v159_v44 = vld [vmem:[#allocation3 + $0x8] sm:$0x3] }
  0x3c   :  { %v71_v50 = vrot.slane %v70_v48, 2  ;;  %v100_v53 = vadd.f32 %v99_v51, %v98_v49 }
  0x3e   :  { %v72_v52 = vadd.f32 %v71_v50, %v70_v48  ;;  %v101_v55 = vrot.slane %v100_v53, 2  ;;  %v210_v48 = vld [vmem:[#allocation3 + $0x2] sm:$0x3] }
  0x40   :  { %v73_v54 = vrot.slane %v72_v52, 1  ;;  %v102_v57 = vadd.f32 %v101_v55, %v100_v53 }
  0x42   :  { %v74_v56 = vadd.f32 %v73_v54, %v72_v52  ;;  %v103_v58 = vrot.slane %v102_v57, 1 }
  0x44   :  { %v105_v59 = vmul.f32 0.0625, %v74_v56  ;;  %v104_v60 = vadd.f32 %v103_v58, %v102_v57 }
  0x46   :  { %v107_v61 = vmul.f32 %v105_v59, %v105_v59  ;;  %v106_v62 = vmul.f32 0.0625, %v104_v60 }
  0x48   :  { %v108_v63 = vsub.f32 %v106_v62, %v107_v61 }
  0x4a   :  { %v109_v4 = vmax.f32 %v108_v63, 0.0 }
  0x4c   :  { %v112_v5 = vadd.f32 1e-05, %v109_v4  ;;  %v211_v4 = vld [vmem:[#allocation3 + $0x4] sm:$0x3] }
  0x4e   :  { %315 = vrsqrt.f32 %v112_v5  ;;  %v212_v5 = vld [vmem:[#allocation3 + $0x6] sm:$0x3] }
  0x58   :  { %v316_v10 = vpop.eup %315 }
  0x59   :  { %v114_v13 = vmul.f32 %v316_v10, %v110_v8  ;;  %v214_v10 = vld [vmem:[#allocation3 + $0xa] sm:$0x3] }
  0x5b   :  { %v115_v17 = vmul.f32 %v114_v13, %v105_v59  ;;  %v118_v18 = vmul.f32 %v117_v11, %v114_v13  ;;  %v153_v19 = vmul.f32 %v152_v12, %v114_v13  ;;  %v207_v25 = vmul.f32 %v206_v20, %v114_v13 }
  0x5d   :  { %v116_v22 = vsub.f32 %v111_v16, %v115_v17  ;;  %v123_v23 = vrot.slane %v118_v18, %v122_v15  ;;  %v165_v24 = vrot.slane %v153_v19, %v122_v15  ;;  %v518_v41 = vrot.slane %v207_v25, %v122_v15 }
  0x5f   :  { %v119_v26 = vmul.f32 %v117_v11, %v116_v22  ;;  %v125_v28 = vmul.f32 %v123_v23, %v448_v1  ;;  %v126_v29 = vmul.f32 %v123_v23, %v450_v2  ;;  %v127_v30 = vmul.f32 %v123_v23, %v452_v3  ;;  %v157_v1 = vld [vmem:[#allocation3 + $0x4] sm:$0x3]  ;;  %v215_v11 = vld [vmem:[#allocation3 + $0xc] sm:$0x3] }
  0x60   :  { %v128_v32 = vmul.f32 %v123_v23, %v464_v9  ;;  %v129_v33 = vmul.f32 %v123_v23, %v472_v14  ;;  %v130_v34 = vmul.f32 %v123_v23, %v481_v21  ;;  %v124_v35 = vmul.f32 %v123_v23, %v446_v0  ;;  %v158_v9 = vld [vmem:[#allocation3 + $0x6] sm:$0x3]  ;;  %v160_v14 = vld [vmem:[#allocation3 + $0xa] sm:$0x3] }
  0x61   :  { %v135_v36 = vrot.slane %v119_v26, %v122_v15  ;;  %v131_v37 = vmul.f32 %v123_v23, %v488_v27  ;;  %v154_v38 = vmul.f32 %v152_v12, %v116_v22  ;;  %v166_v39 = vmul.f32 %v165_v24, %v155_v31  ;;  %v216_v12 = vld [vmem:[#allocation3 + $0xe] sm:$0x3] }
  0x62   :  { %v167_v49 = vmul.f32 %v165_v24, %v156_v40  ;;  %v168_v50 = vmul.f32 %v165_v24, %v157_v1  ;;  %v208_v51 = vmul.f32 %v206_v20, %v116_v22  ;;  %v169_v52 = vmul.f32 %v165_v24, %v158_v9 }
  0x63   :  { %v137_v2 = vadd.f32 %v135_v36, %v125_v28  ;;  %v138_v3 = vadd.f32 %v135_v36, %v126_v29  ;;  %v139_v42 = vadd.f32 %v135_v36, %v127_v30  ;;  %v140_v43 = vadd.f32 %v135_v36, %v128_v32 }
  0x64   :  { %v141_v45 = vadd.f32 %v135_v36, %v129_v33  ;;  %v142_v21 = vadd.f32 %v135_v36, %v130_v34  ;;  %v136_v46 = vadd.f32 %v135_v36, %v124_v35  ;;  %v143_v0 = vadd.f32 %v135_v36, %v131_v37 }
  0x65   :  { %145 = vst [vmem:[#allocation2 + $0x2] sm:$0x3] %v137_v2  ;;  %146 = vst [vmem:[#allocation2 + $0x4] sm:$0x3] %v138_v3  ;;  %v176_v27 = vrot.slane %v154_v38, %v122_v15  ;;  %v170_v53 = vmul.f32 %v165_v24, %v159_v44  ;;  %v171_v54 = vmul.f32 %v165_v24, %v160_v14 }
  0x66   :  { %147 = vst [vmem:[#allocation2 + $0x6] sm:$0x3] %v139_v42  ;;  %148 = vst [vmem:[#allocation2 + $0x8] sm:$0x3] %v140_v43  ;;  %v172_v55 = vmul.f32 %v165_v24, %v161_v47  ;;  %v221_v56 = vmul.f32 %v518_v41, %v210_v48  ;;  %v231_v57 = vrot.slane %v208_v51, %v122_v15 }
  0x67   :  { %149 = vst [vmem:[#allocation2 + $0xa] sm:$0x3] %v141_v45  ;;  %150 = vst [vmem:[#allocation2 + $0xc] sm:$0x3] %v142_v21  ;;  %v177_v58 = vadd.f32 %v176_v27, %v166_v39  ;;  %v178_v59 = vadd.f32 %v176_v27, %v167_v49  ;;  %v179_v60 = vadd.f32 %v176_v27, %v168_v50 }
  0x68   :  { %144 = vst [vmem:[#allocation2] sm:$0x3] %v136_v46  ;;  %151 = vst [vmem:[#allocation2 + $0xe] sm:$0x3] %v143_v0  ;;  %v180_v61 = vadd.f32 %v176_v27, %v169_v52  ;;  %v181_v62 = vadd.f32 %v176_v27, %v170_v53  ;;  %v182_v63 = vadd.f32 %v176_v27, %v171_v54 }
  0x69   :  { %v183_v7 = vadd.f32 %v176_v27, %v172_v55  ;;  %v232_v8 = vadd.f32 %v231_v57, %v221_v56  ;;  %v222_v30 = vmul.f32 %v518_v41, %v211_v4  ;;  %v223_v33 = vmul.f32 %v518_v41, %v212_v5 }
  0x6a   :  { %v224_v34 = vmul.f32 %v518_v41, %v213_v6  ;;  %v225_v35 = vmul.f32 %v518_v41, %v214_v10  ;;  %v226_v36 = vmul.f32 %v518_v41, %v215_v11  ;;  %v227_v37 = vmul.f32 %v518_v41, %v216_v12 }
  0x6b   :  { %v233_v38 = vadd.f32 %v231_v57, %v222_v30  ;;  %v234_v39 = vadd.f32 %v231_v57, %v223_v33 }
  0x6c   :  { %v185_v13 = vld [vmem:[#allocation2 + $0x2] sm:$0x3]  ;;  %v186_v16 = vld [vmem:[#allocation2 + $0x4] sm:$0x3]  ;;  %v235_v40 = vadd.f32 %v231_v57, %v224_v34  ;;  %v236_v1 = vadd.f32 %v231_v57, %v225_v35  ;;  %v237_v2 = vadd.f32 %v231_v57, %v226_v36  ;;  %v238_v3 = vadd.f32 %v231_v57, %v227_v37 }
  0x6d   :  { %v187_v17 = vld [vmem:[#allocation2 + $0x6] sm:$0x3]  ;;  %v192_v18 = vadd.f32 %v185_v13, %v177_v58  ;;  %v193_v19 = vadd.f32 %v186_v16, %v178_v59  ;;  %v188_v20 = vld [vmem:[#allocation2 + $0x8] sm:$0x3] }
  0x6e   :  { %v194_v15 = vadd.f32 %v187_v17, %v179_v60  ;;  %v189_v22 = vld [vmem:[#allocation2 + $0xa] sm:$0x3]  ;;  %v190_v23 = vld [vmem:[#allocation2 + $0xc] sm:$0x3]  ;;  %v195_v24 = vadd.f32 %v188_v20, %v180_v61 }
  0x6f   :  { %v196_v25 = vadd.f32 %v189_v22, %v181_v62  ;;  %v197_v26 = vadd.f32 %v190_v23, %v182_v63  ;;  %v191_v28 = vld [vmem:[#allocation2 + $0xe] sm:$0x3]  ;;  %v239_v29 = vld [vmem:[#allocation2] sm:$0x3]  ;;  %199 = vst [vmem:[#allocation2 + $0x2] sm:$0x3] %v192_v18 }
  0x70   :  { %200 = vst [vmem:[#allocation2 + $0x4] sm:$0x3] %v193_v19  ;;  %201 = vst [vmem:[#allocation2 + $0x6] sm:$0x3] %v194_v15  ;;  %v198_v31 = vadd.f32 %v191_v28, %v183_v7  ;;  %v246_v32 = vadd.f32 %v239_v29, %v232_v8 }
  0x71   :  { %202 = vst [vmem:[#allocation2 + $0x8] sm:$0x3] %v195_v24  ;;  %203 = vst [vmem:[#allocation2 + $0xa] sm:$0x3] %v196_v25 }
  0x72   :  { %204 = vst [vmem:[#allocation2 + $0xc] sm:$0x3] %v197_v26  ;;  %205 = vst [vmem:[#allocation2 + $0xe] sm:$0x3] %v198_v31 }
  0x73   :  { %253 = vst [vmem:[#allocation2] sm:$0x3] %v246_v32 }
  0x76   :  { %v240_v42 = vld [vmem:[#allocation2 + $0x2] sm:$0x3] }
  0x77   :  { %v241_v43 = vld [vmem:[#allocation2 + $0x4] sm:$0x3]  ;;  %v242_v9 = vld [vmem:[#allocation2 + $0x6] sm:$0x3]  ;;  %v247_v44 = vadd.f32 %v240_v42, %v233_v38 }
  0x78   :  { %v248_v14 = vadd.f32 %v241_v43, %v234_v39  ;;  %v249_v45 = vadd.f32 %v242_v9, %v235_v40  ;;  %v243_v21 = vld [vmem:[#allocation2 + $0x8] sm:$0x3]  ;;  %v244_v46 = vld [vmem:[#allocation2 + $0xa] sm:$0x3] }
  0x79   :  { %v245_v0 = vld [vmem:[#allocation2 + $0xc] sm:$0x3]  ;;  %v250_v47 = vadd.f32 %v243_v21, %v236_v1  ;;  %v251_v48 = vadd.f32 %v244_v46, %v237_v2  ;;  %v267_v49 = vld [vmem:[#allocation2 + $0xe] sm:$0x3]  ;;  %254 = vst [vmem:[#allocation2 + $0x2] sm:$0x3] %v247_v44 }
  0x7a   :  { %v252_v41 = vadd.f32 %v245_v0, %v238_v3  ;;  %v260_v27 = vld [vmem:[#allocation2] sm:$0x3]  ;;  %255 = vst [vmem:[#allocation2 + $0x4] sm:$0x3] %v248_v14  ;;  %256 = vst [vmem:[#allocation2 + $0x6] sm:$0x3] %v249_v45 }
  0x7b   :  { %v268_v50 = vmax.f32 %v260_v27, 0.0  ;;  %v275_v51 = vmax.f32 %v267_v49, 0.0  ;;  %257 = vst [vmem:[#allocation2 + $0x8] sm:$0x3] %v250_v47  ;;  %258 = vst [vmem:[#allocation2 + $0xa] sm:$0x3] %v251_v48 }
  0x7c   :  { %259 = vst [vmem:[#allocation2 + $0xc] sm:$0x3] %v252_v41 }
  0x7d   :  { %v276_v52 = vmin.f32 %v268_v50, 20.0  ;;  %v283_v53 = vmin.f32 %v275_v51, 20.0 }
  0x7f   :  { %284 = vst [vmem:[#allocation8] sm:$0x3] %v276_v52  ;;  %291 = vst [vmem:[#allocation8 + $0xe] sm:$0x3] %v283_v53 }
  0x80   :  { %v261_v54 = vld [vmem:[#allocation2 + $0x2] sm:$0x3] }
  0x81   :  { %v262_v55 = vld [vmem:[#allocation2 + $0x4] sm:$0x3]  ;;  %v263_v56 = vld [vmem:[#allocation2 + $0x6] sm:$0x3]  ;;  %v269_v57 = vmax.f32 %v261_v54, 0.0 }
  0x82   :  { %v270_v58 = vmax.f32 %v262_v55, 0.0  ;;  %v271_v59 = vmax.f32 %v263_v56, 0.0  ;;  %v264_v60 = vld [vmem:[#allocation2 + $0x8] sm:$0x3]  ;;  %v265_v62 = vld [vmem:[#allocation2 + $0xa] sm:$0x3] }
  0x83   :  { %v272_v61 = vmax.f32 %v264_v60, 0.0  ;;  %v266_v63 = vld [vmem:[#allocation2 + $0xc] sm:$0x3]  ;;  %v277_v4 = vmin.f32 %v269_v57, 20.0  ;;  %v273_v7 = vmax.f32 %v265_v62, 0.0 }
  0x84   :  { %v278_v5 = vmin.f32 %v270_v58, 20.0  ;;  %v279_v6 = vmin.f32 %v271_v59, 20.0  ;;  %v274_v10 = vmax.f32 %v266_v63, 0.0 }
  0x85   :  { %v280_v8 = vmin.f32 %v272_v61, 20.0  ;;  %285 = vst [vmem:[#allocation8 + $0x2] sm:$0x3] %v277_v4  ;;  %v281_v11 = vmin.f32 %v273_v7, 20.0 }
  0x86   :  { %286 = vst [vmem:[#allocation8 + $0x4] sm:$0x3] %v278_v5  ;;  %287 = vst [vmem:[#allocation8 + $0x6] sm:$0x3] %v279_v6  ;;  %v282_v12 = vmin.f32 %v274_v10, 20.0 }
  0x87   :  { %288 = vst [vmem:[#allocation8 + $0x8] sm:$0x3] %v280_v8  ;;  %289 = vst [vmem:[#allocation8 + $0xa] sm:$0x3] %v281_v11 }
  0x88   :  { %290 = vst [vmem:[#allocation8 + $0xc] sm:$0x3] %v282_v12 }
  0x89   :  { %372 = shalt.err (!%p369_p6)
}
  0x8a   :  { %s373_s20 = scalar_lea.hbm %s546_s4, 256 }
  0x8b   :  { %p374_p7 = scmp.ne.s32.totalorder %s546_s4, %s373_s20  ;;  %p377_p8 = scmp.lt.u32.totalorder %s373_s20, %s546_s4 }
  0x8d   :  { %p379_p9 = pnand %p377_p8, %p374_p7 }
  0x8f   :  { %382 = shalt.err (!%p379_p9)
}
  0x90   :  { %303 = dma.vmem_to_hbm [thread:$0]  %s298_s3, 256, %s546_s4, [#allocation5], %s390_s25, %s390_s25, %s391_s26  }
  0x91   :  { %387 = dma.done.wait [#allocation5], 256  }
  0x92   :  { %388 = vsyncadd [#allocation5], 4294967040 }
  0x93   :  { %307 = vsyncpa [#allocation4], 1 }
  0x94   :  { %308 = vsyncpa [#allocation7], 1 }
  0x95   :  { %309 = vsyncpa [#allocation5], 1 }

</bundles_post_ra>
